<compile_context>
chip_gen: v7x
topology: tpu7x:2x2x1
jax: 0.10.0
libtpu: 0.0.40
codegen_flags: <defaults>
</compile_context>

<pallas_src>
import jax
import jax.numpy as jnp
from jax import lax
from jax.experimental import pallas as pl
from jax.experimental.pallas import tpu as pltpu

EPS = 1e-5
# Leave headroom on v7x (64 MiB physical VMEM); on v5e/v6e this can be raised
# toward ~100 MiB when block sizes are grown.
VMEM_LIMIT_BYTES = 48 * 1024 * 1024


# --------------------------------------------------------------------------
# In-kernel helpers
# --------------------------------------------------------------------------
def _fill_padded(pad_ref, interior_f32, H2, W2, C):
    """Zero the 1-pixel halo of a (H2+2, W2+2, C) scratch and write the interior."""
    zrow = jnp.zeros((1, W2 + 2, C), jnp.float32)
    zcol = jnp.zeros((H2 + 2, 1, C), jnp.float32)
    pad_ref[0:1, :, :] = zrow
    pad_ref[H2 + 1:H2 + 2, :, :] = zrow
    pad_ref[:, 0:1, :] = zcol
    pad_ref[:, W2 + 1:W2 + 2, :] = zcol
    pad_ref[1:H2 + 1, 1:W2 + 1, :] = interior_f32


def _conv3x3(pad_ref, w_ref, H2, W2, C):
    """3x3 'SAME' conv from a padded (H2+2, W2+2, C) scratch.

    C <  128: single K=9*C im2col matmul (best MXU contraction fill, v5e/v6e).
    C >= 128: nine accumulating per-tap K=C matmuls (no 9x im2col VMEM blow-up,
              v7x-friendly; MRB accumulates in place).
    Returns a (H2*W2, Cout) f32 accumulator.
    """
    rows = H2 * W2
    cout = w_ref.shape[1]
    if C >= 128:
        acc = jnp.zeros((rows, cout), jnp.float32)
        tap = 0
        for ky in range(3):
            for kx in range(3):
                patch = pad_ref[ky:ky + H2, kx:kx + W2, :].reshape(rows, C)
                acc = acc + jnp.dot(patch.astype(jnp.bfloat16),
                                    w_ref[tap * C:(tap + 1) * C, :],
                                    preferred_element_type=jnp.float32)
                tap += 1
        return acc
    patches = [pad_ref[ky:ky + H2, kx:kx + W2, :].reshape(rows, C)
               for ky in range(3) for kx in range(3)]
    p = jnp.concatenate(patches, axis=-1).astype(jnp.bfloat16)   # (rows, 9*C)
    return jnp.dot(p, w_ref[...], preferred_element_type=jnp.float32)


def _partial_stats(yf):
    """Per-block (sum, sumsq) channel statistics -> (2, C) f32."""
    s = jnp.sum(yf, axis=0, keepdims=True)
    sq = jnp.sum(yf * yf, axis=0, keepdims=True)
    return jnp.concatenate([s, sq], axis=0)


# --------------------------------------------------------------------------
# Stage kernels (each gridded over the batch axis)
# --------------------------------------------------------------------------
def _pool_conv1_kernel(x_ref, w1_ref, h_ref, s_ref, pad_ref):
    # x_ref: (1, H, W2, 2*Cin) bf16 — horizontal pool partners sit on the lanes.
    _, H, W2, C2 = x_ref.shape
    Cin = C2 // 2
    H2 = H // 2
    Cmid = w1_ref.shape[1]

    # MaxPool2d(2): lane-slice pair max, then split the MAJOR (H) dim only —
    # the minor (W2, C) tile dims are untouched, so no relayout is forced.
    xv = x_ref[0]
    wmax = jnp.maximum(xv[..., :Cin], xv[..., Cin:])          # (H, W2, Cin) bf16
    wm = wmax.reshape(H2, 2, W2, Cin)
    pooled = jnp.maximum(wm[:, 0], wm[:, 1])                  # (H2, W2, Cin)

    _fill_padded(pad_ref, pooled.astype(jnp.float32), H2, W2, Cin)
    acc = _conv3x3(pad_ref, w1_ref, H2, W2, Cin)              # (H2*W2, Cmid) f32

    y_bf = acc.astype(jnp.bfloat16)                           # bf16 HBM staging
    yf = y_bf.astype(jnp.float32)
    s_ref[0] = _partial_stats(yf)                             # (2, Cmid)
    h_ref[0] = y_bf.reshape(H2, W2, Cmid)


def _bn_relu_conv2_kernel(h_ref, sc_ref, sh_ref, w2_ref, o_ref, s_ref, pad_ref):
    # h_ref: (1, H2, W2, Cmid) bf16 raw conv1 output; sc/sh: (1, Cmid) f32.
    _, H2, W2, Cmid = h_ref.shape
    Cout = w2_ref.shape[1]

    y1 = jnp.maximum(h_ref[0].astype(jnp.float32) * sc_ref[...] + sh_ref[...], 0.0)

    _fill_padded(pad_ref, y1, H2, W2, Cmid)
    acc = _conv3x3(pad_ref, w2_ref, H2, W2, Cmid)             # (H2*W2, Cout) f32

    y_bf = acc.astype(jnp.bfloat16)
    yf = y_bf.astype(jnp.float32)
    s_ref[0] = _partial_stats(yf)                             # (2, Cout)
    o_ref[0] = y_bf.reshape(H2, W2, Cout)


def _bn_relu_out_kernel(h_ref, sc_ref, sh_ref, o_ref):
    # Final BatchNorm + ReLU (elementwise), f32 output.
    y = jnp.maximum(h_ref[0].astype(jnp.float32) * sc_ref[...] + sh_ref[...], 0.0)
    o_ref[0] = y


# --------------------------------------------------------------------------
# Wrapper
# --------------------------------------------------------------------------
def _finalize_bn(partial, gamma, beta, count):
    """Reduce per-block partial (sum, sumsq) stats -> per-channel scale/shift."""
    tot = jnp.sum(partial, axis=0)                            # (2, C)
    m = tot[0] / count
    v = jnp.maximum(tot[1] / count - m * m, 0.0)              # clamp cancellation
    scale = gamma.astype(jnp.float32) * lax.rsqrt(v + EPS)
    shift = beta.astype(jnp.float32) - m * scale
    return scale.reshape(1, -1), shift.reshape(1, -1)


def down_forward(x_nchw, params):
    """Down(x): MaxPool2d(2) -> [Conv3x3 -> BN -> ReLU] x2.  x is NCHW."""
    w1, g1, b1, w2, g2, b2 = params            # conv weights are (O, I, 3, 3)
    N, Cin, H, W = x_nchw.shape
    H2, W2 = H // 2, W // 2
    Cmid, Cout = w1.shape[0], w2.shape[0]
    count = N * H2 * W2

    # Layout glue: one NCHW->NHWC transpose writing bf16 (halves staged bytes),
    # plus a free row-major reshape putting each horizontal pool pair on lanes.
    x = jnp.transpose(x_nchw, (0, 2, 3, 1)).astype(jnp.bfloat16)
    x = x.reshape(N, H, W2, 2 * Cin)

    # im2col weight layout: contraction dim ordered (ky, kx, cin); bf16 for MXU.
    w1_flat = jnp.transpose(w1, (2, 3, 1, 0)).reshape(9 * Cin, Cmid).astype(jnp.bfloat16)
    w2_flat = jnp.transpose(w2, (2, 3, 1, 0)).reshape(9 * Cmid, Cout).astype(jnp.bfloat16)

    cparams = pltpu.CompilerParams(dimension_semantics=("parallel",),
                                   vmem_limit_bytes=VMEM_LIMIT_BYTES)

    # ---- stage 1: MaxPool2d(2) + Conv1, partial BN1 stats ----
    h1, s1 = pl.pallas_call(
        _pool_conv1_kernel,
        out_shape=(jax.ShapeDtypeStruct((N, H2, W2, Cmid), jnp.bfloat16),
                   jax.ShapeDtypeStruct((N, 2, Cmid), jnp.float32)),
        grid_spec=pltpu.PrefetchScalarGridSpec(
            num_scalar_prefetch=0, grid=(N,),
            in_specs=[pl.BlockSpec((1, H, W2, 2 * Cin), lambda n: (n, 0, 0, 0)),
                      pl.BlockSpec((9 * Cin, Cmid), lambda n: (0, 0))],
            out_specs=[pl.BlockSpec((1, H2, W2, Cmid), lambda n: (n, 0, 0, 0)),
                       pl.BlockSpec((1, 2, Cmid), lambda n: (n, 0, 0))],
            scratch_shapes=[pltpu.VMEM((H2 + 2, W2 + 2, Cin), jnp.float32)]),
        compiler_params=cparams,
    )(x, w1_flat)

    scale1, shift1 = _finalize_bn(s1, g1, b1, count)          # tiny per-channel math

    # ---- stage 2: BN1 + ReLU + Conv2, partial BN2 stats ----
    h2, s2 = pl.pallas_call(
        _bn_relu_conv2_kernel,
        out_shape=(jax.ShapeDtypeStruct((N, H2, W2, Cout), jnp.bfloat16),
                   jax.ShapeDtypeStruct((N, 2, Cout), jnp.float32)),
        grid_spec=pltpu.PrefetchScalarGridSpec(
            num_scalar_prefetch=0, grid=(N,),
            in_specs=[pl.BlockSpec((1, H2, W2, Cmid), lambda n: (n, 0, 0, 0)),
                      pl.BlockSpec((1, Cmid), lambda n: (0, 0)),
                      pl.BlockSpec((1, Cmid), lambda n: (0, 0)),
                      pl.BlockSpec((9 * Cmid, Cout), lambda n: (0, 0))],
            out_specs=[pl.BlockSpec((1, H2, W2, Cout), lambda n: (n, 0, 0, 0)),
                       pl.BlockSpec((1, 2, Cout), lambda n: (n, 0, 0))],
            scratch_shapes=[pltpu.VMEM((H2 + 2, W2 + 2, Cmid), jnp.float32)]),
        compiler_params=cparams,
    )(h1, scale1, shift1, w2_flat)

    scale2, shift2 = _finalize_bn(s2, g2, b2, count)

    # ---- stage 3: BN2 + ReLU ----
    out_nhwc = pl.pallas_call(
        _bn_relu_out_kernel,
        out_shape=jax.ShapeDtypeStruct((N, H2, W2, Cout), jnp.float32),
        grid_spec=pltpu.PrefetchScalarGridSpec(
            num_scalar_prefetch=0, grid=(N,),
            in_specs=[pl.BlockSpec((1, H2, W2, Cout), lambda n: (n, 0, 0, 0)),
                      pl.BlockSpec((1, Cout), lambda n: (0, 0)),
                      pl.BlockSpec((1, Cout), lambda n: (0, 0))],
            out_specs=pl.BlockSpec((1, H2, W2, Cout), lambda n: (n, 0, 0, 0))),
        compiler_params=cparams,
    )(h2, scale2, shift2)

    return jnp.transpose(out_nhwc, (0, 3, 1, 2))              # back to NCHW


# --------------------------------------------------------------------------
# Pure-JAX reference (NCHW)
# --------------------------------------------------------------------------
def down_reference(x, params, mirror_kernel=True):
    """If mirror_kernel, reproduce the kernel's rounding points (bf16 MXU
    operands, bf16 inter-stage staging) while keeping f32 accumulation/BN."""
    w1, g1, b1, w2, g2, b2 = params
    if mirror_kernel:
        x = x.astype(jnp.bfloat16).astype(jnp.float32)
    pooled = lax.reduce_window(x, -jnp.inf, lax.max,
                               (1, 1, 2, 2), (1, 1, 2, 2), 'VALID')

    def conv_bn_relu(h, w, g, b):
        cd = jnp.bfloat16 if mirror_kernel else jnp.float32
        y = lax.conv_general_dilated(
            h.astype(cd), w.astype(cd), (1, 1), 'SAME',
            dimension_numbers=('NCHW', 'OIHW', 'NCHW'),
            preferred_element_type=jnp.float32)
        if mirror_kernel:
            y = y.astype(jnp.bfloat16).astype(jnp.float32)    # HBM staging rounding
        cnt = y.shape[0] * y.shape[2] * y.shape[3]
        m = jnp.sum(y, axis=(0, 2, 3)) / cnt
        sq = jnp.sum(y * y, axis=(0, 2, 3)) / cnt
        v = jnp.maximum(sq - m * m, 0.0)
        scale = g * lax.rsqrt(v + EPS)
        shift = b - m * scale
        return jnp.maximum(y * scale.reshape(1, -1, 1, 1) + shift.reshape(1, -1, 1, 1), 0.0)

    h = conv_bn_relu(pooled, w1, g1, b1)
    return conv_bn_relu(h, w2, g2, b2)


if __name__ == "__main__":
    # Down(in_channels=4, out_channels=8) on a (2, 4, 16, 16) NCHW input.
    N, Cin, Cout, HW = 2, 4, 8, 16
    key = jax.random.PRNGKey(0)
    kx, k1, k2, kg1, kb1, kg2, kb2 = jax.random.split(key, 7)

    x = jax.random.normal(kx, (N, Cin, HW, HW), jnp.float32)
    w1 = 0.2 * jax.random.normal(k1, (Cout, Cin, 3, 3), jnp.float32)   # mid == out
    w2 = 0.2 * jax.random.normal(k2, (Cout, Cout, 3, 3), jnp.float32)
    g1 = 1.0 + 0.1 * jax.random.normal(kg1, (Cout,), jnp.float32)
    b1 = 0.1 * jax.random.normal(kb1, (Cout,), jnp.float32)
    g2 = 1.0 + 0.1 * jax.random.normal(kg2, (Cout,), jnp.float32)
    b2 = 0.1 * jax.random.normal(kb2, (Cout,), jnp.float32)
    params = (w1, g1, b1, w2, g2, b2)

    out = jax.block_until_ready(down_forward(x, params))
    assert out.shape == (N, Cout, HW // 2, HW // 2), out.shape

    # Tight check vs a reference with identical bf16 operand/staging rounding.
    ref_mirror = jax.block_until_ready(down_reference(x, params, mirror_kernel=True))
    err = float(jnp.max(jnp.abs(out - ref_mirror)))
    if err > 2e-3:
        raise RuntimeError(f"mismatch vs bf16-mirroring reference, max abs err = {err}")

    # Loose sanity check vs the full-f32 reference (bounded by bf16 rounding).
    ref_f32 = jax.block_until_ready(down_reference(x, params, mirror_kernel=False))
    err_f32 = float(jnp.max(jnp.abs(out - ref_f32)))
    if err_f32 > 1e-1:
        raise RuntimeError(f"mismatch vs f32 reference, max abs err = {err_f32}")

    print("KERNEL_OK")
</pallas_src>

<mosaic_0001>
module attributes {stable_mosaic.version = 11 : i64} {
  func.func @_pool_conv1_kernel(%arg0: i32, %arg1: memref<1x16x8x8xbf16, #tpu.memory_space<vmem>>, %arg2: memref<36x8xbf16, #tpu.memory_space<vmem>>, %arg3: memref<1x8x8x8xbf16, #tpu.memory_space<vmem>>, %arg4: memref<1x2x8xf32, #tpu.memory_space<vmem>>, %arg5: memref<10x10x4xf32, #tpu.memory_space<vmem>>) attributes {dimension_semantics = [#tpu.dimension_semantics<parallel>], iteration_bounds = array<i64: 2>, scalar_prefetch = 0 : i64, scratch_operands = 1 : i64, tpu.core_type = #tpu.core_type<tc>, window_params = [{transform_indices = @transform_0, window_bounds = array<i64: 1, 16, 8, 8>}, {pipeline_mode = #tpu.pipeline_mode<synchronous>, transform_indices = @transform_1, window_bounds = array<i64: 36, 8>}, {transform_indices = @transform_2, window_bounds = array<i64: 1, 8, 8, 8>}, {transform_indices = @transform_3, window_bounds = array<i64: 1, 2, 8>}]} {
    %c0 = arith.constant 0 : index
    %c0_0 = arith.constant 0 : index
    %c0_1 = arith.constant 0 : index
    %c0_2 = arith.constant 0 : index
    %0 = vector.load %arg1[%c0, %c0_0, %c0_1, %c0_2] : memref<1x16x8x8xbf16, #tpu.memory_space<vmem>>, vector<1x16x8x8xbf16>
    %1 = vector.shape_cast %0 : vector<1x16x8x8xbf16> to vector<16x8x8xbf16>
    %2 = vector.extract_strided_slice %1 {offsets = [0, 0, 0], sizes = [16, 8, 4], strides = [1, 1, 1]} : vector<16x8x8xbf16> to vector<16x8x4xbf16>
    %3 = vector.extract_strided_slice %1 {offsets = [0, 0, 4], sizes = [16, 8, 4], strides = [1, 1, 1]} : vector<16x8x8xbf16> to vector<16x8x4xbf16>
    %4 = arith.maximumf %2, %3 : vector<16x8x4xbf16>
    %5 = vector.shape_cast %4 : vector<16x8x4xbf16> to vector<8x2x8x4xbf16>
    %6 = vector.extract_strided_slice %5 {offsets = [0, 0, 0, 0], sizes = [8, 1, 8, 4], strides = [1, 1, 1, 1]} : vector<8x2x8x4xbf16> to vector<8x1x8x4xbf16>
    %7 = vector.shape_cast %6 : vector<8x1x8x4xbf16> to vector<8x8x4xbf16>
    %8 = vector.extract_strided_slice %5 {offsets = [0, 1, 0, 0], sizes = [8, 1, 8, 4], strides = [1, 1, 1, 1]} : vector<8x2x8x4xbf16> to vector<8x1x8x4xbf16>
    %9 = vector.shape_cast %8 : vector<8x1x8x4xbf16> to vector<8x8x4xbf16>
    %10 = arith.maximumf %7, %9 : vector<8x8x4xbf16>
    %11 = arith.extf %10 : vector<8x8x4xbf16> to vector<8x8x4xf32>
    %cst = arith.constant 0.000000e+00 : f32
    %12 = vector.broadcast %cst : f32 to vector<1x10x4xf32>
    %cst_3 = arith.constant 0.000000e+00 : f32
    %13 = vector.broadcast %cst_3 : f32 to vector<10x1x4xf32>
    %c0_4 = arith.constant 0 : index
    %c0_5 = arith.constant 0 : index
    %c0_6 = arith.constant 0 : index
    %14 = vector.load %arg5[%c0_4, %c0_5, %c0_6] : memref<10x10x4xf32, #tpu.memory_space<vmem>>, vector<1x10x4xf32>
    tpu.vector_store %arg5[%c0_4, %c0_5, %c0_6], %12 {strides = array<i32>} : memref<10x10x4xf32, #tpu.memory_space<vmem>>, vector<1x10x4xf32>,
    %c9 = arith.constant 9 : index
    %c0_7 = arith.constant 0 : index
    %c0_8 = arith.constant 0 : index
    %15 = vector.load %arg5[%c9, %c0_7, %c0_8] : memref<10x10x4xf32, #tpu.memory_space<vmem>>, vector<1x10x4xf32>
    tpu.vector_store %arg5[%c9, %c0_7, %c0_8], %12 {strides = array<i32>} : memref<10x10x4xf32, #tpu.memory_space<vmem>>, vector<1x10x4xf32>,
    %c0_9 = arith.constant 0 : index
    %c0_10 = arith.constant 0 : index
    %c0_11 = arith.constant 0 : index
    %16 = vector.load %arg5[%c0_9, %c0_10, %c0_11] : memref<10x10x4xf32, #tpu.memory_space<vmem>>, vector<10x1x4xf32>
    tpu.vector_store %arg5[%c0_9, %c0_10, %c0_11], %13 {strides = array<i32>} : memref<10x10x4xf32, #tpu.memory_space<vmem>>, vector<10x1x4xf32>,
    %c0_12 = arith.constant 0 : index
    %c9_13 = arith.constant 9 : index
    %c0_14 = arith.constant 0 : index
    %17 = vector.load %arg5[%c0_12, %c9_13, %c0_14] : memref<10x10x4xf32, #tpu.memory_space<vmem>>, vector<10x1x4xf32>
    tpu.vector_store %arg5[%c0_12, %c9_13, %c0_14], %13 {strides = array<i32>} : memref<10x10x4xf32, #tpu.memory_space<vmem>>, vector<10x1x4xf32>,
    %c1 = arith.constant 1 : index
    %c1_15 = arith.constant 1 : index
    %c0_16 = arith.constant 0 : index
    %18 = vector.load %arg5[%c1, %c1_15, %c0_16] : memref<10x10x4xf32, #tpu.memory_space<vmem>>, vector<8x8x4xf32>
    tpu.vector_store %arg5[%c1, %c1_15, %c0_16], %11 {strides = array<i32>} : memref<10x10x4xf32, #tpu.memory_space<vmem>>, vector<8x8x4xf32>,
    %c0_17 = arith.constant 0 : index
    %c0_18 = arith.constant 0 : index
    %c0_19 = arith.constant 0 : index
    %19 = vector.load %arg5[%c0_17, %c0_18, %c0_19] : memref<10x10x4xf32, #tpu.memory_space<vmem>>, vector<8x8x4xf32>
    %20 = vector.shape_cast %19 : vector<8x8x4xf32> to vector<64x4xf32>
    %c0_20 = arith.constant 0 : index
    %c1_21 = arith.constant 1 : index
    %c0_22 = arith.constant 0 : index
    %21 = vector.load %arg5[%c0_20, %c1_21, %c0_22] : memref<10x10x4xf32, #tpu.memory_space<vmem>>, vector<8x8x4xf32>
    %22 = vector.shape_cast %21 : vector<8x8x4xf32> to vector<64x4xf32>
    %c0_23 = arith.constant 0 : index
    %c2 = arith.constant 2 : index
    %c0_24 = arith.constant 0 : index
    %23 = vector.load %arg5[%c0_23, %c2, %c0_24] : memref<10x10x4xf32, #tpu.memory_space<vmem>>, vector<8x8x4xf32>
    %24 = vector.shape_cast %23 : vector<8x8x4xf32> to vector<64x4xf32>
    %c1_25 = arith.constant 1 : index
    %c0_26 = arith.constant 0 : index
    %c0_27 = arith.constant 0 : index
    %25 = vector.load %arg5[%c1_25, %c0_26, %c0_27] : memref<10x10x4xf32, #tpu.memory_space<vmem>>, vector<8x8x4xf32>
    %26 = vector.shape_cast %25 : vector<8x8x4xf32> to vector<64x4xf32>
    %c1_28 = arith.constant 1 : index
    %c1_29 = arith.constant 1 : index
    %c0_30 = arith.constant 0 : index
    %27 = vector.load %arg5[%c1_28, %c1_29, %c0_30] : memref<10x10x4xf32, #tpu.memory_space<vmem>>, vector<8x8x4xf32>
    %28 = vector.shape_cast %27 : vector<8x8x4xf32> to vector<64x4xf32>
    %c1_31 = arith.constant 1 : index
    %c2_32 = arith.constant 2 : index
    %c0_33 = arith.constant 0 : index
    %29 = vector.load %arg5[%c1_31, %c2_32, %c0_33] : memref<10x10x4xf32, #tpu.memory_space<vmem>>, vector<8x8x4xf32>
    %30 = vector.shape_cast %29 : vector<8x8x4xf32> to vector<64x4xf32>
    %c2_34 = arith.constant 2 : index
    %c0_35 = arith.constant 0 : index
    %c0_36 = arith.constant 0 : index
    %31 = vector.load %arg5[%c2_34, %c0_35, %c0_36] : memref<10x10x4xf32, #tpu.memory_space<vmem>>, vector<8x8x4xf32>
    %32 = vector.shape_cast %31 : vector<8x8x4xf32> to vector<64x4xf32>
    %c2_37 = arith.constant 2 : index
    %c1_38 = arith.constant 1 : index
    %c0_39 = arith.constant 0 : index
    %33 = vector.load %arg5[%c2_37, %c1_38, %c0_39] : memref<10x10x4xf32, #tpu.memory_space<vmem>>, vector<8x8x4xf32>
    %34 = vector.shape_cast %33 : vector<8x8x4xf32> to vector<64x4xf32>
    %c2_40 = arith.constant 2 : index
    %c2_41 = arith.constant 2 : index
    %c0_42 = arith.constant 0 : index
    %35 = vector.load %arg5[%c2_40, %c2_41, %c0_42] : memref<10x10x4xf32, #tpu.memory_space<vmem>>, vector<8x8x4xf32>
    %36 = vector.shape_cast %35 : vector<8x8x4xf32> to vector<64x4xf32>
    %37 = tpu.concatenate %20, %22, %24, %26, %28, %30, %32, %34, %36 in 1 : vector<64x4xf32>, vector<64x4xf32>, vector<64x4xf32>, vector<64x4xf32>, vector<64x4xf32>, vector<64x4xf32>, vector<64x4xf32>, vector<64x4xf32>, vector<64x4xf32> -> vector<64x36xf32>
    %38 = arith.truncf %37 : vector<64x36xf32> to vector<64x36xbf16>
    %c0_43 = arith.constant 0 : index
    %c0_44 = arith.constant 0 : index
    %39 = vector.load %arg2[%c0_43, %c0_44] : memref<36x8xbf16, #tpu.memory_space<vmem>>, vector<36x8xbf16>
    %cst_45 = arith.constant dense<0.000000e+00> : vector<64x8xf32>
    %40 = tpu.matmul %38, %39, %cst_45 {dimension_numbers = #tpu.dot_dimension_numbers<[1], [0], [0], [1], [0, 0, 1, 1], [], []>} : vector<64x36xbf16>, vector<36x8xbf16>, vector<64x8xf32> -> vector<64x8xf32>
    %41 = arith.truncf %40 : vector<64x8xf32> to vector<64x8xbf16>
    %42 = arith.extf %41 : vector<64x8xbf16> to vector<64x8xf32>
    %cst_46 = arith.constant dense<0.000000e+00> : vector<8xf32>
    %43 = vector.multi_reduction <add>, %42, %cst_46 [0] : vector<64x8xf32> to vector<8xf32>
    %44 = vector.shape_cast %43 : vector<8xf32> to vector<1x8xf32>
    %45 = arith.mulf %42, %42 : vector<64x8xf32>
    %cst_47 = arith.constant dense<0.000000e+00> : vector<8xf32>
    %46 = vector.multi_reduction <add>, %45, %cst_47 [0] : vector<64x8xf32> to vector<8xf32>
    %47 = vector.shape_cast %46 : vector<8xf32> to vector<1x8xf32>
    %48 = tpu.concatenate %44, %47 in 0 : vector<1x8xf32>, vector<1x8xf32> -> vector<2x8xf32>
    %c0_48 = arith.constant 0 : index
    %c0_49 = arith.constant 0 : index
    %c0_50 = arith.constant 0 : index
    %49 = vector.load %arg4[%c0_48, %c0_49, %c0_50] : memref<1x2x8xf32, #tpu.memory_space<vmem>>, vector<1x2x8xf32>
    %50 = vector.shape_cast %49 : vector<1x2x8xf32> to vector<2x8xf32>
    %51 = vector.shape_cast %48 : vector<2x8xf32> to vector<1x2x8xf32>
    tpu.vector_store %arg4[%c0_48, %c0_49, %c0_50], %51 {strides = array<i32>} : memref<1x2x8xf32, #tpu.memory_space<vmem>>, vector<1x2x8xf32>,
    %52 = vector.shape_cast %41 : vector<64x8xbf16> to vector<8x8x8xbf16>
    %c0_51 = arith.constant 0 : index
    %c0_52 = arith.constant 0 : index
    %c0_53 = arith.constant 0 : index
    %c0_54 = arith.constant 0 : index
    %53 = vector.load %arg3[%c0_51, %c0_52, %c0_53, %c0_54] : memref<1x8x8x8xbf16, #tpu.memory_space<vmem>>, vector<1x8x8x8xbf16>
    %54 = vector.shape_cast %53 : vector<1x8x8x8xbf16> to vector<8x8x8xbf16>
    %55 = vector.shape_cast %52 : vector<8x8x8xbf16> to vector<1x8x8x8xbf16>
    tpu.vector_store %arg3[%c0_51, %c0_52, %c0_53, %c0_54], %55 {strides = array<i32>} : memref<1x8x8x8xbf16, #tpu.memory_space<vmem>>, vector<1x8x8x8xbf16>,
    return
  }
  func.func @transform_0(%arg0: i32) -> (i32, i32, i32, i32) {
    %c0_i32 = arith.constant 0 : i32
    %c0_i32_0 = arith.constant 0 : i32
    %c0_i32_1 = arith.constant 0 : i32
    %c0_i32_2 = arith.constant 0 : i32
    return %arg0, %c0_i32, %c0_i32_0, %c0_i32_1 : i32, i32, i32, i32
  }
  func.func @transform_1(%arg0: i32) -> (i32, i32) {
    %c0_i32 = arith.constant 0 : i32
    %c0_i32_0 = arith.constant 0 : i32
    %c0_i32_1 = arith.constant 0 : i32
    return %c0_i32, %c0_i32_0 : i32, i32
  }
  func.func @transform_2(%arg0: i32) -> (i32, i32, i32, i32) {
    %c0_i32 = arith.constant 0 : i32
    %c0_i32_0 = arith.constant 0 : i32
    %c0_i32_1 = arith.constant 0 : i32
    %c0_i32_2 = arith.constant 0 : i32
    return %arg0, %c0_i32, %c0_i32_0, %c0_i32_1 : i32, i32, i32, i32
  }
  func.func @transform_3(%arg0: i32) -> (i32, i32, i32) {
    %c0_i32 = arith.constant 0 : i32
    %c0_i32_0 = arith.constant 0 : i32
    %c0_i32_1 = arith.constant 0 : i32
    return %arg0, %c0_i32, %c0_i32_0 : i32, i32, i32
  }
}

</mosaic_0001>

<bundles_post_ra>
// kernel: tpu_custom_call.1
= control target key start
LH: loop header
LB: loop body
LE: loop exit
PB: predicated region body
PF: predicated region fallthrough
CT: control target
= control target key end

     0   :  { %9 = vsyncpa [#allocation4], 0  ;;  %s1900_s0 = inlined_call_operand.vmem [shape: bf16[2,16,8,8], index: 0, kind: input, shape index: {}]   ;;  %s1901_s1 = inlined_call_operand.vmem [shape: bf16[36,8], index: 1, kind: input, shape index: {}]   ;;  %s1902_s2 = inlined_call_operand.hbm [shape: bf16[2,8,8,8], index: 2, kind: output, shape index: {0}]   ;;  %s1903_s3 = inlined_call_operand.hbm [shape: f32[2,2,8], index: 3, kind: output, shape index: {1}]  }
   0x1   :  { %11 = vsyncpa [#allocation4 + $0x1], 0 }
   0x2   :  { %12 = vsyncpa [#allocation6], 0 }
   0x3   :  { %14 = vsyncpa [#allocation6 + $0x1], 0  ;;  %s1481_s12 = smov 0   ;;  %s1483_s13 = smov 0  }
   0x4   :  { %s1485_s14 = smov 0   ;;  %s1487_s15 = smov 0  }
   0x5 LB: > { %s1502_s16 = sadd.s32 4294967295, %s1446_s15   ;;  %s1065_s17 = sadd.s32 4294967294, %s1446_s15   ;;  %s1446_s15 = sphi %s1487_s15, %s1909_s15   ;;  %s1442_s14 = sphi %s1485_s14, %s1908_s14   ;;  %s1438_s13 = sphi %s1483_s13, %s1907_s13   ;;  %s1434_s12 = sphi %s1481_s12, %s1906_s12  }
   0x6   : > { %s1506_s18 = sadd.s32 1, %s1446_s15   ;;  %s74_s19 = sadd.s32 1, %s1442_s14 }
   0x7   : > { %s71_s20 = ssub.s32 %s1446_s15, %s1506_s18  ;;  %p84_p0 = scmp.ne.s32.totalorder %s1442_s14, %s1438_s13 }
   0x8   : > { %p72_p1 = scmp.eq.s32.totalorder %s71_s20, 0  ;;  %p85_p2 = scmp.eq.s32.totalorder %s1502_s16, 1 }
   0x9   : > { %p90_p3 = scmp.ne.s32.totalorder %s1438_s13, %s1434_s12  ;;  %p91_p4 = scmp.eq.s32.totalorder %s1065_s17, 1 }
   0xa   : > { %s1517_s21 = scalar_select %p72_p1, %s1442_s14, %s74_s19  }
   0xb   : > { %p1519_p5 = por %p85_p2, %p84_p0  ;;  %p1523_p6 = por %p91_p4, %p90_p3 }
   0xc   : > { %p1068_p7 = scmp.ge.s32.totalorder %s1446_s15, 1  ;;  %p146_p8 = scmp.lt.s32.totalorder %s1446_s15, 3 }
   0xe   : > { %p147_p9 = pnand %p1068_p7, %p146_p8 }
   0xf   : > { %p175_p10 = scmp.lt.s32.totalorder (!%p147_p9), %s1502_s16, 1  ;;  %vm293_vm0 = vcmask (!%p147_p9), 31744   ;;  %vm295_vm1 = vcmask (!%p147_p9), 25600   ;;  %v1448_v0 = vmov (!%p147_p9), 0.0   ;;  %vm300_vm2 = vcmask (!%p147_p9), 24576   ;;  %s1449_s29 = smov (!%p147_p9), 124  }
  0x10   : > { %150 = sbr.rel (%p147_p9) target bundleno = 616 (0x268), region = 28  ;;  %294 = vst.msk [vmem:[#allocation2] sm:$0xff] (!%p147_p9), %vm293_vm0, %v1448_v0  ;;  %298 = vst.msk [vmem:[#allocation2 + $0x90] sm:$0xff] (!%p147_p9), %vm293_vm0, %v1448_v0  ;;  %s1450_s30 = smov (!%p147_p9), 4   ;;  %vm767_vm3 = vcmask (!%p147_p9), 1041408   ;;  %vm667_vm4 = vcmask (!%p147_p9), 64512  }
  0x11   : > { %296 = vst.msk [vmem:[#allocation2 + $0x8] sm:$0x3] (!%p147_p9), %vm295_vm1, %v1448_v0  ;;  %299 = vst.msk [vmem:[#allocation2 + $0x98] sm:$0x3] (!%p147_p9), %vm295_vm1, %v1448_v0  ;;  %s1451_s4 = smov (!%p147_p9), 8   ;;  %s1452_s5 = smov (!%p147_p9), 12  }
  0x12   : > { %311 = vst.msk [vmem:[#allocation2 + $0x9] sm:$0x1] (!%p147_p9), %vm300_vm2, %v1448_v0  ;;  %312 = vst.msk [vmem:[#allocation2 + $0x19] sm:$0x1] (!%p147_p9), %vm300_vm2, %v1448_v0  ;;  %s1453_s6 = smov (!%p147_p9), 16   ;;  %s1454_s7 = smov (!%p147_p9), 20  }
  0x13   : > { %301 = vst.msk [vmem:[#allocation2] sm:$0x1] (!%p147_p9), %vm300_vm2, %v1448_v0  ;;  %302 = vst.msk [vmem:[#allocation2 + $0x10] sm:$0x1] (!%p147_p9), %vm300_vm2, %v1448_v0  ;;  %s1455_s10 = smov (!%p147_p9), 24   ;;  %vm676_vm5 = vcmask (!%p147_p9), 97280  }
  0x14   : > { %303 = vst.msk [vmem:[#allocation2 + $0x20] sm:$0x1] (!%p147_p9), %vm300_vm2, %v1448_v0  ;;  %304 = vst.msk [vmem:[#allocation2 + $0x30] sm:$0x1] (!%p147_p9), %vm300_vm2, %v1448_v0  ;;  %vm685_vm6 = vcmask (!%p147_p9), 130048   ;;  %vm694_vm7 = vcmask (!%p147_p9), 162816  }
  0x15   : > { %305 = vst.msk [vmem:[#allocation2 + $0x40] sm:$0x1] (!%p147_p9), %vm300_vm2, %v1448_v0  ;;  %306 = vst.msk [vmem:[#allocation2 + $0x50] sm:$0x1] (!%p147_p9), %vm300_vm2, %v1448_v0  ;;  %vm703_vm8 = vcmask (!%p147_p9), 195584   ;;  %vm712_vm9 = vcmask (!%p147_p9), 228352  }
  0x16   : > { %307 = vst.msk [vmem:[#allocation2 + $0x60] sm:$0x1] (!%p147_p9), %vm300_vm2, %v1448_v0  ;;  %308 = vst.msk [vmem:[#allocation2 + $0x70] sm:$0x1] (!%p147_p9), %vm300_vm2, %v1448_v0  ;;  %vm721_vm10 = vcmask (!%p147_p9), 261120   ;;  %vm754_vm11 = vcmask (!%p147_p9), 293888  }
  0x17   : > { %s1531_s24 = scalar_select %p175_p10, %s1502_s16, 1  ;;  %309 = vst.msk [vmem:[#allocation2 + $0x80] sm:$0x1] %vm300_vm2, %v1448_v0  ;;  %310 = vst.msk [vmem:[#allocation2 + $0x90] sm:$0x1] %vm300_vm2, %v1448_v0  ;;  %vm930_vm12 = vcmask 60416  }
  0x18   : > { %313 = vst.msk [vmem:[#allocation2 + $0x29] sm:$0x1] %vm300_vm2, %v1448_v0  ;;  %314 = vst.msk [vmem:[#allocation2 + $0x39] sm:$0x1] %vm300_vm2, %v1448_v0  ;;  %v338_v42 = vld [vmem:[#allocation2 + $0x1] sm:$0xff]  ;;  %s1781_s26 = sand.u32 1, %s1438_s13  }
  0x19   : > { %s1095_s25 = sshll.u32 %s1531_s24, 6  ;;  %315 = vst.msk [vmem:[#allocation2 + $0x49] sm:$0x1] %vm300_vm2, %v1448_v0  ;;  %316 = vst.msk [vmem:[#allocation2 + $0x59] sm:$0x1] %vm300_vm2, %v1448_v0  ;;  %v346_v49 = vld [vmem:[#allocation2 + $0x2] sm:$0xff] }
  0x1a   : > { %317 = vst.msk [vmem:[#allocation2 + $0x69] sm:$0x1] %vm300_vm2, %v1448_v0  ;;  %318 = vst.msk [vmem:[#allocation2 + $0x79] sm:$0x1] %vm300_vm2, %v1448_v0  ;;  %s1559_s28 = scalar_lea.vmem %s1900_s0, %s1095_s25  ;;  %s1456_s24 = smov 28  }
  0x1b   : > { %319 = vst.msk [vmem:[#allocation2 + $0x89] sm:$0x1] %vm300_vm2, %v1448_v0  ;;  %320 = vst.msk [vmem:[#allocation2 + $0x99] sm:$0x1] %vm300_vm2, %v1448_v0  ;;  %v183_v1 = vld [vmem:[%s1559_s28 + $0x8] sm:$0xf] }
  0x1c   : > { %v181_v2 = vld [vmem:[%s1559_s28] sm:$0xf]  ;;  %217 = vrot.lane.b32.xlu1 %v183_v1, %s1449_s29  ;;  %v184_v3 = vld [vmem:[%s1559_s28 + $0xc] sm:$0xf]  ;;  %v182_v4 = vld [vmem:[%s1559_s28 + $0x4] sm:$0xf] }
  0x1d   : > { %213 = vrot.lane.b32.xlu0 %v181_v2, %s1449_s29  ;;  %v186_v5 = vld [vmem:[%s1559_s28 + $0x14] sm:$0xf]  ;;  %v185_v6 = vld [vmem:[%s1559_s28 + $0x10] sm:$0xf]  ;;  %v188_v7 = vld [vmem:[%s1559_s28 + $0x1c] sm:$0xf] }
  0x1e   : > { %v187_v8 = vld [vmem:[%s1559_s28 + $0x18] sm:$0xf]  ;;  %v190_v9 = vld [vmem:[%s1559_s28 + $0x24] sm:$0xf]  ;;  %v189_v10 = vld [vmem:[%s1559_s28 + $0x20] sm:$0xf] }
  0x1f   : > { %v1572_v11 = vld [vmem:[%s1559_s28 + $0x2c] sm:$0xf]  ;;  %v191_v12 = vld [vmem:[%s1559_s28 + $0x28] sm:$0xf]  ;;  %v1577_v13 = vld [vmem:[%s1559_s28 + $0x34] sm:$0xf] }
  0x20   : > { %219 = vrot.lane.b32.xlu1 %v184_v3, %s1449_s29  ;;  %v1580_v14 = vld [vmem:[%s1559_s28 + $0x30] sm:$0xf]  ;;  %v1585_v15 = vld [vmem:[%s1559_s28 + $0x3c] sm:$0xf]  ;;  %v1588_v16 = vld [vmem:[%s1559_s28 + $0x38] sm:$0xf] }
  0x21   : > { %215 = vrot.lane.b32.xlu0 %v182_v4, %s1449_s29  ;;  %s1457_s25 = smov 32   ;;  %s1069_s27 = sshll.u32 %s1781_s26, 5 }
  0x22   : > { %s1784_s28 = scalar_lea.vmem [#allocation3], %s1069_s27  ;;  %s940_s8 = scalar_lea.sflag [#allocation4], %s1781_s26 }
  0x24   : > { %223 = vrot.lane.b32.xlu1 %v186_v5, %s1449_s29 }
  0x25   : > { %221 = vrot.lane.b32.xlu0 %v185_v6, %s1449_s29 }
  0x28   : > { %227 = vrot.lane.b32.xlu1 %v188_v7, %s1449_s29 }
  0x29   : > { %225 = vrot.lane.b32.xlu0 %v187_v8, %s1449_s29 }
  0x2c   : > { %231 = vrot.lane.b32.xlu1 %v190_v9, %s1449_s29 }
  0x2d   : > { %229 = vrot.lane.b32.xlu0 %v189_v10, %s1449_s29 }
  0x30   : > { %235 = vrot.lane.b32.xlu1 %v1572_v11, %s1449_s29 }
  0x31   : > { %233 = vrot.lane.b32.xlu0 %v191_v12, %s1449_s29 }
  0x34   : > { %239 = vrot.lane.b32.xlu1 %v1577_v13, %s1449_s29 }
  0x35   : > { %237 = vrot.lane.b32.xlu0 %v1580_v14, %s1449_s29 }
  0x38   : > { %243 = vrot.lane.b32.xlu1 %v1585_v15, %s1449_s29 }
  0x39   : > { %241 = vrot.lane.b32.xlu0 %v1588_v16, %s1449_s29  ;;  %s1104_s29 = sshll.u32 %s1502_s16, 9 }
  0x8e   : > { %v218_v17 = vpop.permute.xlu1 %217 }
  0x8f   : > { %v214_v18 = vpop.permute.xlu0 %213  ;;  %v263_v21 = vmax.bf16 %v218_v17, %v183_v1 }
  0x90   : > { %v261_v22 = vmax.bf16 %v214_v18, %v181_v2 }
  0x92   : > { %v220_v19 = vpop.permute.xlu1 %219 }
  0x93   : > { %v216_v20 = vpop.permute.xlu0 %215  ;;  %v264_v23 = vmax.bf16 %v220_v19, %v184_v3 }
  0x94   : > { %v262_v24 = vmax.bf16 %v216_v20, %v182_v4 }
  0x95   : > { %v278_v25 = vmax.bf16 %v264_v23, %v263_v21 }
  0x96   : > { %v277_v26 = vmax.bf16 %v262_v24, %v261_v22  ;;  %v224_v27 = vpop.permute.xlu1 %223 }
  0x97   : > { %v222_v28 = vpop.permute.xlu0 %221  ;;  %v286_v29 = vunpack.c.l.bf16 %v278_v25  ;;  %v266_v31 = vmax.bf16 %v224_v27, %v186_v5 }
  0x98   : > { %v285_v30 = vunpack.c.l.bf16 %v277_v26  ;;  %v265_v32 = vmax.bf16 %v222_v28, %v185_v6  ;;  %v1349_v28 = vld [vmem:[%s1901_s1] sm:$0xff]  }
  0x99   : > { %323 = vst.msk [vmem:[#allocation2 + $0x21] sm:$0xff] %vm293_vm0, %v286_v29  ;;  %1112 = vmatprep.subr.bf16.mxu0 %v1349_v28  ;;  %1126 = vmatprep.subr.bf16.mxu1 %v1349_v28 }
  0x9a   : > { %322 = vst.msk [vmem:[#allocation2 + $0x11] sm:$0xff] %vm293_vm0, %v285_v30  ;;  %v279_v33 = vmax.bf16 %v266_v31, %v265_v32  ;;  %v228_v34 = vpop.permute.xlu1 %227  ;;  %1113 = vmatpush3.bf16.msra.mxu0 %v1349_v28  ;;  %1129 = vmatpush3.bf16.msra.mxu1 %v1349_v28 }
  0x9b   : > { %v226_v35 = vpop.permute.xlu0 %225  ;;  %v268_v37 = vmax.bf16 %v228_v34, %v188_v7 }
  0x9c   : > { %v287_v36 = vunpack.c.l.bf16 %v279_v33  ;;  %v267_v38 = vmax.bf16 %v226_v35, %v187_v8  ;;  %v1350_v33 = vld [vmem:[%s1901_s1 + $0x8] sm:$0xff]  }
  0x9d   : > { %1114 = vmatprep.subr.bf16.mxu0 %v1350_v33  ;;  %1127 = vmatprep.subr.bf16.mxu1 %v1350_v33 }
  0x9e   : > { %324 = vst.msk [vmem:[#allocation2 + $0x31] sm:$0xff] %vm293_vm0, %v287_v36  ;;  %v280_v39 = vmax.bf16 %v268_v37, %v267_v38  ;;  %v232_v40 = vpop.permute.xlu1 %231  ;;  %1115 = vmatpush3.bf16.msra.mxu0 %v1350_v33  ;;  %v1351_v36 = vld [vmem:[%s1901_s1 + $0x10] ss:$0 sps:$4 sm:$0x33]   ;;  %1130 = vmatpush3.bf16.msra.mxu1 %v1350_v33 }
  0x9f   : > { %v230_v41 = vpop.permute.xlu0 %229  ;;  %v270_v44 = vmax.bf16 %v232_v40, %v190_v9  ;;  %1132 = vmatprep.subr.msk.bf16.mxu0 %vm767_vm3, %v1351_v36  ;;  %v769_v37 = vsel %vm767_vm3, %v1351_v36, 0  ;;  %1133 = vmatprep.subr.msk.bf16.mxu1 %vm767_vm3, %v1351_v36 }
  0xa0   : > { %v288_v43 = vunpack.c.l.bf16 %v280_v39  ;;  %v269_v45 = vmax.bf16 %v230_v41, %v189_v10  ;;  %v340_v56 = vld [vmem:[#allocation2 + $0x21] sm:$0xff] }
  0xa1   : > { %v339_v46 = vld [vmem:[#allocation2 + $0x11] sm:$0xff]  ;;  %v1603_v62 = vld [vmem:[#allocation2 + $0x20] sm:$0xff] }
  0xa2   : > { %325 = vst.msk [vmem:[#allocation2 + $0x41] sm:$0xff] %vm293_vm0, %v288_v43  ;;  %v281_v47 = vmax.bf16 %v270_v44, %v269_v45  ;;  %v1189_v48 = vpack.i.bf16 %v339_v46, %v338_v42  ;;  %v347_v50 = vld [vmem:[#allocation2 + $0x12] sm:$0xff]  ;;  %v236_v51 = vpop.permute.xlu1 %235  ;;  %v348_v5 = vld [vmem:[#allocation2 + $0x22] sm:$0xff]  ;;  %v1219_v18 = vpack.i.bf16 %v340_v56, %v339_v46  ;;  %1117 = vmatpush3.bf16.msra.mxu0 %v769_v37 }
  0xa3   : > { %v234_v52 = vpop.permute.xlu0 %233  ;;  %v272_v54 = vmax.bf16 %v236_v51, %v1572_v11  ;;  %v1199_v58 = vpack.i.bf16 %v347_v50, %v346_v49  ;;  %v1601_v61 = vld [vmem:[#allocation2 + $0x10] sm:$0xff]  ;;  %1131 = vmatpush3.bf16.msra.mxu1 %v769_v37 }
  0xa4   : > { %v289_v53 = vunpack.c.l.bf16 %v281_v47  ;;  %1190 = vrot.lane.b32.xlu0 %v1189_v48, %s1450_s30  ;;  %v271_v55 = vmax.bf16 %v234_v52, %v191_v12  ;;  %v1209_v6 = vpack.i.bf16 %v1603_v62, %v1601_v61 }
  0xa5   : > { %v341_v57 = vld [vmem:[#allocation2 + $0x31] sm:$0xff] }
  0xa6   : > { %326 = vst.msk [vmem:[#allocation2 + $0x51] sm:$0xff] %vm293_vm0, %v289_v53  ;;  %v1599_v59 = vpack.i.bf16 %v341_v57, %v340_v56  ;;  %v282_v60 = vmax.bf16 %v272_v54, %v271_v55  ;;  %v349_v63 = vld [vmem:[#allocation2 + $0x32] sm:$0xff]  ;;  %v240_v0 = vpop.permute.xlu1 %239 }
  0xa7   : > { %v238_v1 = vpop.permute.xlu0 %237  ;;  %v274_v3 = vmax.bf16 %v240_v0, %v1577_v13  ;;  %v1613_v7 = vpack.i.bf16 %v349_v63, %v348_v5  ;;  %v1622_v17 = vld [vmem:[#allocation2 + $0x30] sm:$0xff] }
  0xa8   : > { %1200 = vrot.lane.b32.xlu0 %v1199_v58, %s1451_s4  ;;  %1195 = vrot.lane.b32.xlu1 %v1599_v59, %s1450_s30  ;;  %v290_v2 = vunpack.c.l.bf16 %v282_v60  ;;  %v273_v4 = vmax.bf16 %v238_v1, %v1580_v14  ;;  %v1239_v24 = vpack.i.bf16 %v1622_v17, %v1603_v62  ;;  %v386_v54 = vld [vmem:[#allocation2 + $0x90] sm:$0xff] }
  0xa9   : > { %v1615_v9 = vld [vmem:[#allocation2 + $0x40] sm:$0xff]  ;;  %v394_v56 = vld [vmem:[#allocation2 + $0x91] sm:$0xff] }
  0xaa   : > { %327 = vst.msk [vmem:[#allocation2 + $0x61] sm:$0xff] %vm293_vm0, %v290_v2  ;;  %v283_v8 = vmax.bf16 %v274_v3, %v273_v4  ;;  %v244_v10 = vpop.permute.xlu1 %243  ;;  %v1214_v19 = vpack.i.bf16 %v1615_v9, %v1622_v17  ;;  %v365_v21 = vld [vmem:[#allocation2 + $0x41] sm:$0xff]  ;;  %v402_v58 = vld [vmem:[#allocation2 + $0x92] sm:$0xff] }
  0xab   : > { %v242_v11 = vpop.permute.xlu0 %241  ;;  %v276_v13 = vmax.bf16 %v244_v10, %v1585_v15  ;;  %v1229_v15 = vpack.i.bf16 %v348_v5, %v347_v50  ;;  %v373_v23 = vld [vmem:[#allocation2 + $0x42] sm:$0xff] }
  0xac   : > { %1210 = vrot.lane.b32.xlu0 %v1209_v6, %s1452_s5  ;;  %1205 = vrot.lane.b32.xlu1 %v1613_v7, %s1451_s4  ;;  %v291_v12 = vunpack.c.l.bf16 %v283_v8  ;;  %v275_v14 = vmax.bf16 %v242_v11, %v1588_v16  ;;  %v1224_v16 = vpack.i.bf16 %v365_v21, %v341_v57  ;;  %v1234_v25 = vpack.i.bf16 %v373_v23, %v349_v63 }
  0xad   : > { %v1634_v26 = vld [vmem:[#allocation2 + $0x50] sm:$0xff] }
  0xae   : > { %328 = vst.msk [vmem:[#allocation2 + $0x71] sm:$0xff] %vm293_vm0, %v291_v12  ;;  %v284_v20 = vmax.bf16 %v276_v13, %v275_v14  ;;  %v343_v27 = vld [vmem:[#allocation2 + $0x51] sm:$0xff]  ;;  %v1249_v30 = vpack.i.bf16 %v1634_v26, %v1615_v9  ;;  %v330_v14 = vld [vmem:[#allocation2] sm:$0xff] }
  0xaf   : > { %v1244_v31 = vpack.i.bf16 %v343_v27, %v365_v21  ;;  %v351_v35 = vld [vmem:[#allocation2 + $0x52] sm:$0xff] }
  0xb0   : > { %1220 = vrot.lane.b32.xlu0 %v1219_v18, %s1453_s6  ;;  %1215 = vrot.lane.b32.xlu1 %v1214_v19, %s1452_s5  ;;  %v292_v22 = vunpack.c.l.bf16 %v284_v20  ;;  %v1264_v38 = vpack.i.bf16 %v351_v35, %v373_v23 }
  0xb1   : > { %v344_v32 = vld [vmem:[#allocation2 + $0x61] sm:$0xff] }
  0xb2   : > { %329 = vst.msk [vmem:[#allocation2 + $0x81] sm:$0xff] %vm293_vm0, %v292_v22  ;;  %v352_v40 = vld [vmem:[#allocation2 + $0x62] sm:$0xff]  ;;  %v1299_v46 = vpack.i.bf16 %v344_v32, %v343_v27 }
  0xb3   : > { %v1656_v42 = vld [vmem:[#allocation2 + $0x60] sm:$0xff]  ;;  %v1309_v49 = vpack.i.bf16 %v352_v40, %v351_v35 }
  0xb4   : > { %1230 = vrot.lane.b32.xlu0 %v1229_v15, %s1454_s7  ;;  %1225 = vrot.lane.b32.xlu1 %v1224_v16, %s1453_s6  ;;  %v1284_v43 = vpack.i.bf16 %v1656_v42, %v1634_v26 }
  0xb5   : > { %v345_v29 = vld [vmem:[#allocation2 + $0x71] sm:$0xff] }
  0xb6   : > { %v1259_v34 = vpack.i.bf16 %v345_v29, %v344_v32  ;;  %v353_v39 = vld [vmem:[#allocation2 + $0x72] sm:$0xff] }
  0xb7   : > { %v1279_v41 = vpack.i.bf16 %v353_v39, %v352_v40  ;;  %v1665_v45 = vld [vmem:[#allocation2 + $0x70] sm:$0xff] }
  0xb8   : > { %1240 = vrot.lane.b32.xlu0 %v1239_v24, %s1455_s10  ;;  %1235 = vrot.lane.b32.xlu1 %v1234_v25, %s1454_s7  ;;  %v1319_v52 = vpack.i.bf16 %v1665_v45, %v1656_v42 }
  0xb9   : > { %v361_v44 = vld [vmem:[#allocation2 + $0x80] sm:$0xff] }
  0xba   : > { %v1294_v47 = vpack.i.bf16 %v361_v44, %v1665_v45  ;;  %v369_v48 = vld [vmem:[#allocation2 + $0x81] sm:$0xff]  ;;  %v1324_v55 = vpack.i.bf16 %v386_v54, %v361_v44 }
  0xbb   : > { %v1304_v50 = vpack.i.bf16 %v369_v48, %v345_v29  ;;  %v377_v51 = vld [vmem:[#allocation2 + $0x82] sm:$0xff]  ;;  %v1334_v57 = vpack.i.bf16 %v394_v56, %v369_v48 }
  0xbc   : > { %1250 = vrot.lane.b32.xlu0 %v1249_v30, %s1455_s10  ;;  %1245 = vrot.lane.b32.xlu1 %v1244_v31, %s1450_s30  ;;  %v1314_v53 = vpack.i.bf16 %v377_v51, %v353_v39 }
  0xc0   : > { %1255 = vrot.lane.b32.xlu1 %v1599_v59, %s1456_s24  ;;  %1260 = vrot.lane.b32.xlu0 %v1259_v34, %s1450_s30  ;;  %v1344_v59 = vpack.i.bf16 %v402_v58, %v377_v51 }
  0xc4   : > { %1265 = vrot.lane.b32.xlu1 %v1264_v38, %s1451_s4  ;;  %1270 = vrot.lane.b32.xlu0 %v1244_v31, %s1456_s24 }
  0xc8   : > { %1275 = vrot.lane.b32.xlu1 %v1613_v7, %s1457_s25  ;;  %1280 = vrot.lane.b32.xlu0 %v1279_v41, %s1451_s4  ;;  %s958_s4 = sshll.u32 %s1784_s28, 4  ;;  %s1813_s4 = int_to_ptr.vmem [resolvable:$true] %s958_s4 }
  0xc9   : > { %s1352_s9 = scalar_lea.vmem %s1813_s4, 512 }
  0xca   : > { %p1353_p11 = scmp.ne.s32.totalorder %s1813_s4, %s1352_s9 }
  0xcc   : > { %1285 = vrot.lane.b32.xlu1 %v1284_v43, %s1452_s5  ;;  %1290 = vrot.lane.b32.xlu0 %v1264_v38, %s1457_s25  ;;  %p1354_p12 = pnand %p1353_p11, %p1519_p5 }
  0xce   : > { %p1355_p13 = pneg %p1354_p12 }
  0xd0   : > { %1300 = vrot.lane.b32.xlu0 %v1299_v46, %s1453_s6  ;;  %1295 = vrot.lane.b32.xlu1 %v1294_v47, %s1452_s5 }
  0xd4   : > { %1310 = vrot.lane.b32.xlu0 %v1309_v49, %s1454_s7  ;;  %1305 = vrot.lane.b32.xlu1 %v1304_v50, %s1453_s6 }
  0xd8   : > { %1320 = vrot.lane.b32.xlu0 %v1319_v52, %s1455_s10  ;;  %1315 = vrot.lane.b32.xlu1 %v1314_v53, %s1454_s7  ;;  %s1809_s7 = scalar_lea.hbm %s1902_s2, %s1104_s29 }
  0xdc   : > { %1330 = vrot.lane.b32.xlu0 %v1259_v34, %s1456_s24  ;;  %1325 = vrot.lane.b32.xlu1 %v1324_v55, %s1455_s10  ;;  %s1458_s10 = smov [#allocation3]  }
  0xdd   : > { %s1356_s11 = sshll.u32 %s1458_s10, 4  ;;  %s1357_s11 = int_to_ptr.vmem [resolvable:$false] %s1356_s11 }
  0xde   : > { %s1358_s17 = scalar_lea.vmem %s1357_s11, 1024  ;;  %p1359_p0 = scmp.lt.s32.totalorder %s1813_s4, %s1357_s11 }
  0xdf   : > { %p1360_p1 = scmp.lt.s32.totalorder %s1358_s17, %s1352_s9 }
  0xe0   : > { %1340 = vrot.lane.b32.xlu0 %v1279_v41, %s1457_s25  ;;  %1335 = vrot.lane.b32.xlu1 %v1334_v57, %s1456_s24 }
  0xe1   : > { %p1361_p2 = por %p1360_p1, %p1359_p0 }
  0xe3   : > { %p1362_p3 = pnand %p1361_p2, %p1355_p13 }
  0xe4   : > { %1345 = vrot.lane.b32.xlu1 %v1344_v59, %s1457_s25 }
 0x116   : > { %v1191_v60 = vpop.permute.xlu0 %1190 }
 0x117   : > { %v1193_v10 = vunpack.i.h.bf16 %v1191_v60  ;;  %v1192_v11 = vunpack.i.l.bf16 %v1191_v60 }
 0x119   : > { %v660_v22 = vsel %vm293_vm0, %v1601_v61, %v1193_v10  ;;  %v659_v15 = vsel %vm293_vm0, %v330_v14, %v1192_v11 }
 0x11a   : > { %v1196_v63 = vpop.permute.xlu1 %1195  ;;  %v1201_v0 = vpop.permute.xlu0 %1200 }
 0x11b   : > { %v1198_v18 = vunpack.i.h.bf16 %v1196_v63  ;;  %v1197_v19 = vunpack.i.l.bf16 %v1196_v63  ;;  %v1203_v20 = vunpack.i.h.bf16 %v1201_v0  ;;  %v1202_v21 = vunpack.i.l.bf16 %v1201_v0 }
 0x11d   : > { %v661_v31 = vsel %vm293_vm0, %v1603_v62, %v1197_v19  ;;  %v662_v32 = vsel %vm293_vm0, %v1622_v17, %v1198_v18  ;;  %v668_v34 = vsel %vm667_vm4, %v659_v15, %v1202_v21  ;;  %v669_v35 = vsel %vm667_vm4, %v660_v22, %v1203_v20 }
 0x11e   : > { %v1206_v1 = vpop.permute.xlu1 %1205  ;;  %v1211_v2 = vpop.permute.xlu0 %1210 }
 0x11f   : > { %v1208_v16 = vunpack.i.h.bf16 %v1206_v1  ;;  %v1207_v23 = vunpack.i.l.bf16 %v1206_v1  ;;  %v1213_v27 = vunpack.i.h.bf16 %v1211_v2  ;;  %v1212_v28 = vunpack.i.l.bf16 %v1211_v2 }
 0x121   : > { %v670_v38 = vsel %vm667_vm4, %v661_v31, %v1207_v23  ;;  %v671_v39 = vsel %vm667_vm4, %v662_v32, %v1208_v16  ;;  %v677_v17 = vsel %vm676_vm5, %v668_v34, %v1212_v28  ;;  %v678_v44 = vsel %vm676_vm5, %v669_v35, %v1213_v27 }
 0x122   : > { %v1216_v3 = vpop.permute.xlu1 %1215  ;;  %v1221_v4 = vpop.permute.xlu0 %1220 }
 0x123   : > { %v1218_v29 = vunpack.i.h.bf16 %v1216_v3  ;;  %v1217_v30 = vunpack.i.l.bf16 %v1216_v3  ;;  %v1223_v33 = vunpack.i.h.bf16 %v1221_v4  ;;  %v1222_v61 = vunpack.i.l.bf16 %v1221_v4 }
 0x125   : > { %v680_v46 = vsel %vm676_vm5, %v671_v39, %v1218_v29  ;;  %v679_v47 = vsel %vm676_vm5, %v670_v38, %v1217_v30  ;;  %v686_v48 = vsel %vm685_vm6, %v677_v17, %v1222_v61  ;;  %v687_v49 = vsel %vm685_vm6, %v678_v44, %v1223_v33 }
 0x126   : > { %v1681_v5 = vpop.permute.xlu1 %1225  ;;  %v1231_v6 = vpop.permute.xlu0 %1230 }
 0x127   : > { %v1233_v36 = vunpack.i.h.bf16 %v1231_v6  ;;  %v1232_v37 = vunpack.i.l.bf16 %v1231_v6  ;;  %v1228_v52 = vunpack.i.h.bf16 %v1681_v5  ;;  %v1227_v53 = vunpack.i.l.bf16 %v1681_v5 }
 0x129   : > { %v695_v54 = vsel %vm694_vm7, %v686_v48, %v1232_v37  ;;  %v696_v55 = vsel %vm694_vm7, %v687_v49, %v1233_v36  ;;  %v689_v10 = vsel %vm685_vm6, %v680_v46, %v1228_v52 }
 0x12a   : > { %v1683_v7 = vpop.permute.xlu1 %1235  ;;  %v1241_v8 = vpop.permute.xlu0 %1240 }
 0x12b   : > { %v1243_v40 = vunpack.i.h.bf16 %v1241_v8  ;;  %v1242_v41 = vunpack.i.l.bf16 %v1241_v8  ;;  %v1238_v56 = vunpack.i.h.bf16 %v1683_v7  ;;  %v1237_v57 = vunpack.i.l.bf16 %v1683_v7 }
 0x12c   : > { %v688_v7 = vsel %vm685_vm6, %v679_v47, %v1227_v53 }
 0x12d   : > { %v704_v58 = vsel %vm703_vm8, %v695_v54, %v1242_v41  ;;  %v705_v59 = vsel %vm703_vm8, %v696_v55, %v1243_v40  ;;  %v697_v18 = vsel %vm694_vm7, %v688_v7, %v1237_v57 }
 0x12e   : > { %v1685_v12 = vpop.permute.xlu1 %1245  ;;  %v1687_v13 = vpop.permute.xlu0 %1250 }
 0x12f   : > { %v1253_v0 = vunpack.i.h.bf16 %v1687_v13  ;;  %v1252_v1 = vunpack.i.l.bf16 %v1687_v13  ;;  %v698_v13 = vsel %vm694_vm7, %v689_v10, %v1238_v56  ;;  %v1248_v33 = vunpack.i.h.bf16 %v1685_v12 }
 0x130   : > { %v1247_v61 = vunpack.i.l.bf16 %v1685_v12 }
 0x131   : > { %v707_v22 = vsel %vm703_vm8, %v698_v13, %v1253_v0  ;;  %v706_v15 = vsel %vm703_vm8, %v697_v18, %v1252_v1  ;;  %v664_v41 = vsel %vm293_vm0, %v1634_v26, %v1248_v33 }
 0x132   : > { %v1256_v24 = vpop.permute.xlu1 %1255  ;;  %v1692_v25 = vpop.permute.xlu0 %1260  ;;  %v663_v40 = vsel %vm293_vm0, %v1615_v9, %v1247_v61 }
 0x133   : > { %v1258_v50 = vunpack.i.h.bf16 %v1256_v24  ;;  %v1257_v51 = vunpack.i.l.bf16 %v1256_v24  ;;  %v1263_v36 = vunpack.i.h.bf16 %v1692_v25  ;;  %v1262_v37 = vunpack.i.l.bf16 %v1692_v25 }
 0x135   : > { %v713_v6 = vsel %vm712_vm9, %v704_v58, %v1257_v51  ;;  %v714_v8 = vsel %vm712_vm9, %v705_v59, %v1258_v50  ;;  %v666_v25 = vsel %vm293_vm0, %v1665_v45, %v1263_v36 }
 0x136   : > { %v1702_v43 = vpop.permute.xlu1 %1265  ;;  %v1271_v62 = vpop.permute.xlu0 %1270 }
 0x137   : > { %v1273_v4 = vunpack.i.h.bf16 %v1271_v62  ;;  %v1272_v5 = vunpack.i.l.bf16 %v1271_v62  ;;  %v1268_v38 = vunpack.i.h.bf16 %v1702_v43  ;;  %v1267_v39 = vunpack.i.l.bf16 %v1702_v43 }
 0x138   : > { %v665_v43 = vsel %vm293_vm0, %v1656_v42, %v1262_v37 }
 0x139   : > { %v715_v24 = vsel %vm712_vm9, %v706_v15, %v1272_v5  ;;  %v716_v27 = vsel %vm712_vm9, %v707_v22, %v1273_v4  ;;  %v672_v9 = vsel %vm667_vm4, %v663_v40, %v1267_v39  ;;  %v673_v26 = vsel %vm667_vm4, %v664_v41, %v1268_v38 }
 0x13a   : > { %v1276_v60 = vpop.permute.xlu1 %1275  ;;  %v1281_v63 = vpop.permute.xlu0 %1280 }
 0x13b   : > { %v1278_v2 = vunpack.i.h.bf16 %v1276_v60  ;;  %v1277_v3 = vunpack.i.l.bf16 %v1276_v60  ;;  %v1283_v62 = vunpack.i.h.bf16 %v1281_v63  ;;  %v1282_v17 = vunpack.i.l.bf16 %v1281_v63 }
 0x13d   : > { %v722_v11 = vsel %vm721_vm10, %v713_v6, %v1277_v3  ;;  %v723_v14 = vsel %vm721_vm10, %v714_v8, %v1278_v2  ;;  %v674_v54 = vsel %vm667_vm4, %v665_v43, %v1282_v17  ;;  %v675_v55 = vsel %vm667_vm4, %v666_v25, %v1283_v62 }
 0x13e   : > { %v1286_v19 = vpop.permute.xlu1 %1285  ;;  %v1291_v20 = vpop.permute.xlu0 %1290  ;;  %v730_v21 = vpack.c.bf16 %v723_v14, %v722_v11 }
 0x13f   : > { %v1293_v16 = vunpack.i.h.bf16 %v1291_v20  ;;  %v1292_v23 = vunpack.i.l.bf16 %v1291_v20  ;;  %v1288_v46 = vunpack.i.h.bf16 %v1286_v19  ;;  %v1287_v47 = vunpack.i.l.bf16 %v1286_v19 }
 0x140   : > { %1118 = vmatprep.mubr.msk.bf16.mxu0 %vm754_vm11, %v730_v21 }
 0x141   : > { %v724_v28 = vsel %vm721_vm10, %v715_v24, %v1292_v23  ;;  %v725_v29 = vsel %vm721_vm10, %v716_v27, %v1293_v16  ;;  %v682_v45 = vsel %vm676_vm5, %v673_v26, %v1288_v46  ;;  %v681_v42 = vsel %vm676_vm5, %v672_v9, %v1287_v47 }
 0x142   : > { %v731_v30 = vpack.c.bf16 %v725_v29, %v724_v28  ;;  %v1296_v31 = vpop.permute.xlu1 %1295  ;;  %v1301_v32 = vpop.permute.xlu0 %1300 }
 0x143   : > { %v1298_v48 = vunpack.i.h.bf16 %v1296_v31  ;;  %v1297_v49 = vunpack.i.l.bf16 %v1296_v31  ;;  %v1303_v50 = vunpack.i.h.bf16 %v1301_v32  ;;  %v1302_v51 = vunpack.i.l.bf16 %v1301_v32 }
 0x144   : > { %1119 = vmatmul.mubr.msk.bf16.vlgmr.msra.gmra.mrb[0].mxu0 %vm754_vm11, %v731_v30 }
 0x145   : > { %v683_v60 = vsel %vm676_vm5, %v674_v54, %v1297_v49  ;;  %v684_v63 = vsel %vm676_vm5, %v675_v55, %v1298_v48  ;;  %v691_v0 = vsel %vm685_vm6, %v682_v45, %v1303_v50  ;;  %v690_v1 = vsel %vm685_vm6, %v681_v42, %v1302_v51 }
 0x146   : > { %v1306_v34 = vpop.permute.xlu1 %1305  ;;  %v1311_v35 = vpop.permute.xlu0 %1310 }
 0x147   : > { %v1313_v52 = vunpack.i.h.bf16 %v1311_v35  ;;  %v1312_v53 = vunpack.i.l.bf16 %v1311_v35  ;;  %v1308_v4 = vunpack.i.h.bf16 %v1306_v34  ;;  %v1307_v5 = vunpack.i.l.bf16 %v1306_v34 }
 0x149   : > { %v699_v6 = vsel %vm694_vm7, %v690_v1, %v1312_v53  ;;  %v700_v8 = vsel %vm694_vm7, %v691_v0, %v1313_v52  ;;  %v692_v27 = vsel %vm685_vm6, %v683_v60, %v1307_v5  ;;  %v693_v28 = vsel %vm685_vm6, %v684_v63, %v1308_v4 }
 0x14a   : > { %v1316_v44 = vpop.permute.xlu1 %1315  ;;  %v1321_v12 = vpop.permute.xlu0 %1320 }
 0x14b   : > { %v1323_v56 = vunpack.i.h.bf16 %v1321_v12  ;;  %v1322_v57 = vunpack.i.l.bf16 %v1321_v12  ;;  %v1318_v7 = vunpack.i.h.bf16 %v1316_v44  ;;  %v1317_v10 = vunpack.i.l.bf16 %v1316_v44 }
 0x14d   : > { %v708_v11 = vsel %vm703_vm8, %v699_v6, %v1322_v57  ;;  %v709_v14 = vsel %vm703_vm8, %v700_v8, %v1323_v56  ;;  %v701_v31 = vsel %vm694_vm7, %v692_v27, %v1317_v10  ;;  %v702_v32 = vsel %vm694_vm7, %v693_v28, %v1318_v7 }
 0x14e   : > { %v1326_v58 = vpop.permute.xlu1 %1325  ;;  %v1331_v59 = vpop.permute.xlu0 %1330 }
 0x14f   : > { %v1333_v2 = vunpack.i.h.bf16 %v1331_v59  ;;  %v1332_v3 = vunpack.i.l.bf16 %v1331_v59  ;;  %v1328_v19 = vunpack.i.h.bf16 %v1326_v58  ;;  %v1327_v20 = vunpack.i.l.bf16 %v1326_v58 }
 0x151   : > { %v717_v23 = vsel %vm712_vm9, %v708_v11, %v1332_v3  ;;  %v718_v24 = vsel %vm712_vm9, %v709_v14, %v1333_v2  ;;  %v710_v34 = vsel %vm703_vm8, %v701_v31, %v1327_v20  ;;  %v711_v35 = vsel %vm703_vm8, %v702_v32, %v1328_v19 }
 0x152   : > { %v1336_v18 = vpop.permute.xlu1 %1335  ;;  %v1341_v13 = vpop.permute.xlu0 %1340 }
 0x153   : > { %v1343_v21 = vunpack.i.h.bf16 %v1341_v13  ;;  %v1342_v22 = vunpack.i.l.bf16 %v1341_v13  ;;  %v1338_v15 = vunpack.i.h.bf16 %v1336_v18  ;;  %v1337_v16 = vunpack.i.l.bf16 %v1336_v18 }
 0x155   : > { %v726_v29 = vsel %vm721_vm10, %v717_v23, %v1342_v22  ;;  %v727_v30 = vsel %vm721_vm10, %v718_v24, %v1343_v21  ;;  %v719_v38 = vsel %vm712_vm9, %v710_v34, %v1337_v16  ;;  %v720_v39 = vsel %vm712_vm9, %v711_v35, %v1338_v15 }
 0x156   : > { %v1346_v33 = vpop.permute.xlu1 %1345  ;;  %v732_v61 = vpack.c.bf16 %v727_v30, %v726_v29 }
 0x157   : > { %v1348_v36 = vunpack.i.h.bf16 %v1346_v33  ;;  %v1347_v37 = vunpack.i.l.bf16 %v1346_v33 }
 0x158   : > { %1122 = vmatprep.mubr.msk.bf16.mxu1 %vm754_vm11, %v732_v61 }
 0x159   : > { %v728_v40 = vsel %vm721_vm10, %v719_v38, %v1347_v37  ;;  %v729_v41 = vsel %vm721_vm10, %v720_v39, %v1348_v36 }
 0x15a   : > { %v733_v62 = vpack.c.bf16 %v729_v41, %v728_v40 }
 0x15c   : > { %1123 = vmatmul.mubr.msk.bf16.vlgmr.msra.gmra.mrb[0].mxu1 %vm754_vm11, %v733_v62 }
 0x217   : > { %v1120_v17 = vpop.f32.mrb[0].mxu0 }
 0x218   : > { %v1098_v44 = vpack.c.bf16 %v1120_v17, %v1120_v17  ;;  %v805_v12 = vpop.f32.mrb[1].mxu0 }
 0x219   : > { %v1096_v46 = vpack.c.bf16 %v805_v12, %v805_v12  ;;  %v1121_v47 = vpop.f32.mrb[2].mxu0 }
 0x21a   : > { %933 = vst.msk [vmem:[%s1784_s28 + $0x8] sm:$0xf] %vm930_vm12, %v1098_v44  ;;  %v837_v48 = vpack.c.bf16 %v1121_v47, %v1120_v17  ;;  %v1099_v49 = vpack.c.bf16 %v1121_v47, %v1121_v47  ;;  %v808_v25 = vpop.f32.mrb[3].mxu0 }
 0x21b   : > { %931 = vst.msk [vmem:[%s1784_s28] sm:$0xf] %vm930_vm12, %v1096_v46  ;;  %v836_v43 = vpack.c.bf16 %v808_v25, %v805_v12  ;;  %v1097_v50 = vpack.c.bf16 %v808_v25, %v808_v25 }
 0x21c   : > { %v842_v51 = vunpack.c.l.bf16 %v837_v48  ;;  %934 = vst.msk [vmem:[%s1784_s28 + $0xc] sm:$0xf] %vm930_vm12, %v1099_v49  ;;  %v843_v9 = vunpack.c.h.bf16 %v837_v48 }
 0x21d   : > { %v840_v26 = vunpack.c.l.bf16 %v836_v43  ;;  %v841_v52 = vunpack.c.h.bf16 %v836_v43  ;;  %932 = vst.msk [vmem:[%s1784_s28 + $0x4] sm:$0xf] %vm930_vm12, %v1097_v50 }
 0x21e   : > { %v871_v53 = vmul.f32 %v842_v51, %v842_v51  ;;  %v851_v59 = vsel %vm667_vm4, %v842_v51, 0.0  ;;  %v872_v45 = vmul.f32 %v843_v9, %v843_v9  ;;  %v853_v1 = vsel %vm667_vm4, %v843_v9, 0.0 }
 0x21f   : > { %v848_v54 = vsel %vm667_vm4, %v840_v26, 0.0  ;;  %v849_v55 = vsel %vm667_vm4, %v841_v52, 0.0  ;;  %v869_v56 = vmul.f32 %v840_v26, %v840_v26  ;;  %v870_v57 = vmul.f32 %v841_v52, %v841_v52 }
 0x220   : > { %v850_v58 = vadd.f32 %v849_v55, %v848_v54  ;;  %v880_v2 = vsel %vm667_vm4, %v871_v53, 0.0  ;;  %v882_v5 = vsel %vm667_vm4, %v872_v45, 0.0 }
 0x221   : > { %v877_v42 = vsel %vm667_vm4, %v869_v56, 0.0  ;;  %v878_v60 = vsel %vm667_vm4, %v870_v57, 0.0 }
 0x222   : > { %v852_v63 = vadd.f32 %v851_v59, %v850_v58  ;;  %v879_v0 = vadd.f32 %v878_v60, %v877_v42 }
 0x224   : > { %v881_v3 = vadd.f32 %v880_v2, %v879_v0  ;;  %v854_v4 = vadd.f32 %v853_v1, %v852_v63 }
 0x226   : > { %v883_v6 = vadd.f32 %v882_v5, %v881_v3 }
 0x22f   : > { %v1124_v8 = vpop.f32.mrb[0].mxu1 }
 0x230   : > { %v1102_v7 = vpack.c.bf16 %v1124_v8, %v1124_v8  ;;  %v821_v10 = vpop.f32.mrb[1].mxu1 }
 0x231   : > { %v1100_v11 = vpack.c.bf16 %v821_v10, %v821_v10  ;;  %v1125_v14 = vpop.f32.mrb[2].mxu1 }
 0x232   : > { %937 = vst.msk [vmem:[%s1784_s28 + $0x18] sm:$0xf] %vm930_vm12, %v1102_v7  ;;  %v839_v18 = vpack.c.bf16 %v1125_v14, %v1124_v8  ;;  %v1103_v13 = vpack.c.bf16 %v1125_v14, %v1125_v14  ;;  %v824_v19 = vpop.f32.mrb[3].mxu1 }
 0x233   : > { %935 = vst.msk [vmem:[%s1784_s28 + $0x10] sm:$0xf] %vm930_vm12, %v1100_v11  ;;  %v838_v20 = vpack.c.bf16 %v824_v19, %v821_v10  ;;  %v1101_v21 = vpack.c.bf16 %v824_v19, %v824_v19 }
 0x234   : > { %938 = vst.msk [vmem:[%s1784_s28 + $0x1c] sm:$0xf] %vm930_vm12, %v1103_v13  ;;  %v846_v22 = vunpack.c.l.bf16 %v839_v18 }
 0x235   : > { %v844_v15 = vunpack.c.l.bf16 %v838_v20  ;;  %v845_v16 = vunpack.c.h.bf16 %v838_v20  ;;  %936 = vst.msk [vmem:[%s1784_s28 + $0x14] sm:$0xf] %vm930_vm12, %v1101_v21 }
 0x236   : > { %1365 = shalt.err (!%p1362_p3)
}
 0x237   : > { %s1366_s19 = scalar_lea.hbm %s1809_s7, 512  ;;  %s1370_s25 = scalar_lea.hbm %s1902_s2, 1024 }
 0x238   : > { %p1367_p4 = scmp.ne.s32.totalorder %s1809_s7, %s1366_s19  ;;  %p1371_p9 = scmp.lt.u32.totalorder %s1809_s7, %s1902_s2 }
 0x239   : > { %p1372_p10 = scmp.lt.u32.totalorder %s1370_s25, %s1366_s19  ;;  %p1374_p12 = scmp.lt.u32.totalorder %s1366_s19, %s1809_s7 }
 0x23a   : > { %p1368_p7 = pnand %p1367_p4, %p1519_p5 }
 0x23b   : > { %p1373_p11 = por %p1372_p10, %p1371_p9 }
 0x23c   : > { %p1369_p8 = pneg %p1368_p7 }
 0x23d   : > { %p1375_p13 = por %p1374_p12, %p1373_p11 }
 0x23f   : > { %p1376_p0 = pnand %p1375_p13, %p1369_p8 }
 0x241   : > { %1379 = shalt.err (!%p1376_p0)
}
 0x242   : > { %s1459_s29 = smov 64   ;;  %v847_v23 = vunpack.c.h.bf16 %v839_v18  ;;  %v855_v24 = vsel %vm667_vm4, %v844_v15, 0.0  ;;  %v873_v27 = vmul.f32 %v844_v15, %v844_v15  ;;  %v874_v28 = vmul.f32 %v845_v16, %v845_v16  ;;  %s945_s10 = scalar_lea.sflag [#allocation6], %s1781_s26 }
 0x243   : > { %1134 = dma.vmem_to_hbm [thread:$0]  (%p1519_p5), %s1813_s4, 512, %s1809_s7, %s940_s8, %s1459_s29, %s1459_s29, %s1450_s30   ;;  %v856_v29 = vadd.f32 %v855_v24, %v854_v4  ;;  %v875_v30 = vmul.f32 %v846_v22, %v846_v22  ;;  %v857_v31 = vsel %vm667_vm4, %v845_v16, 0.0  ;;  %v859_v34 = vsel %vm667_vm4, %v846_v22, 0.0 }
 0x244   : > { %v884_v32 = vsel %vm667_vm4, %v873_v27, 0.0  ;;  %v876_v35 = vmul.f32 %v847_v23, %v847_v23  ;;  %v886_v36 = vsel %vm667_vm4, %v874_v28, 0.0  ;;  %v861_v39 = vsel %vm667_vm4, %v847_v23, 0.0  ;;  %s1070_s30 = sshll.u32 %s1781_s26, 1  ;;  %s1092_s4 = sshll.u32 %s1502_s16, 5 }
 0x245   : > { %v858_v33 = vadd.f32 %v857_v31, %v856_v29  ;;  %v885_v61 = vadd.f32 %v884_v32, %v883_v6  ;;  %v888_v40 = vsel %vm667_vm4, %v875_v30, 0.0  ;;  %s174_s5 = scalar_lea.vmem [#allocation5], %s1070_s30  ;;  %vm898_vm13 = vcmask 1040384   ;;  %s1857_s9 = scalar_lea.hbm %s1903_s3, %s1092_s4 }
 0x246   : > { %v890_v17 = vsel %vm667_vm4, %v876_v35, 0.0  ;;  %s974_s6 = sshll.u32 %s174_s5, 4  ;;  %vm900_vm14 = vcmask 58368   ;;  %s1460_s11 = smov [#allocation5]   ;;  %s1859_s6 = int_to_ptr.vmem [resolvable:$true] %s974_s6 }
 0x247   : > { %v860_v37 = vadd.f32 %v859_v34, %v858_v33  ;;  %v887_v38 = vadd.f32 %v886_v36, %v885_v61  ;;  %s1380_s16 = scalar_lea.vmem %s1859_s6, 32  ;;  %s1384_s17 = sshll.u32 %s1460_s11, 4  ;;  %s1385_s17 = int_to_ptr.vmem [resolvable:$false] %s1384_s17 }
 0x248   : > { %p1381_p1 = scmp.ne.s32.totalorder %s1859_s6, %s1380_s16  ;;  %s1386_s19 = scalar_lea.vmem %s1385_s17, 64 }
 0x249   : > { %v862_v41 = vadd.f32 %v861_v39, %v860_v37  ;;  %v889_v62 = vadd.f32 %v888_v40, %v887_v38  ;;  %p1387_p4 = scmp.lt.s32.totalorder %s1859_s6, %s1385_s17  ;;  %p1388_p7 = scmp.lt.s32.totalorder %s1386_s19, %s1380_s16 }
 0x24a   : > { %p1382_p2 = pnand %p1381_p1, %p1519_p5 }
 0x24b   : > { %v863_v44 = vrot.slane %v862_v41, 4  ;;  %v891_v12 = vadd.f32 %v890_v17, %v889_v62  ;;  %p1389_p8 = por %p1388_p7, %p1387_p4 }
 0x24c   : > { %p1383_p3 = pneg %p1382_p2 }
 0x24d   : > { %v864_v46 = vadd.f32 %v863_v44, %v862_v41  ;;  %v892_v47 = vrot.slane %v891_v12, 4 }
 0x24e   : > { %p1390_p9 = pnand %p1389_p8, %p1383_p3 }
 0x24f   : > { %v865_v48 = vrot.slane %v864_v46, 2  ;;  %v893_v49 = vadd.f32 %v892_v47, %v891_v12 }
 0x251   : > { %v866_v25 = vadd.f32 %v865_v48, %v864_v46  ;;  %v894_v43 = vrot.slane %v893_v49, 2 }
 0x253   : > { %v867_v50 = vrot.slane %v866_v25, 1  ;;  %v895_v51 = vadd.f32 %v894_v43, %v893_v49 }
 0x255   : > { %v896_v9 = vrot.slane %v895_v51, 1  ;;  %v868_v26 = vadd.f32 %v867_v50, %v866_v25 }
 0x257   : > { %v897_v52 = vadd.f32 %v896_v9, %v895_v51 }
 0x259   : > { %v899_v53 = vsel %vm898_vm13, %v868_v26, %v897_v52 }
 0x25a   : > { %901 = vst.msk [vmem:[%s174_s5] sm:$0x3] %vm900_vm14, %v899_v53 }
 0x25b   : > { %1393 = shalt.err (!%p1390_p9)
}
 0x25c   : > { %s1394_s26 = scalar_lea.hbm %s1857_s9, 32  ;;  %s1398_s25 = scalar_lea.hbm %s1903_s3, 64 }
 0x25d   : > { %p1395_p10 = scmp.ne.s32.totalorder %s1857_s9, %s1394_s26  ;;  %p1399_p13 = scmp.lt.u32.totalorder %s1857_s9, %s1903_s3 }
 0x25e   : > { %p1400_p0 = scmp.lt.u32.totalorder %s1398_s25, %s1394_s26  ;;  %p1402_p2 = scmp.lt.u32.totalorder %s1394_s26, %s1857_s9 }
 0x25f   : > { %p1396_p11 = pnand %p1395_p10, %p1519_p5 }
 0x260   : > { %p1401_p1 = por %p1400_p0, %p1399_p13 }
 0x261   : > { %p1397_p12 = pneg %p1396_p11 }
 0x262   : > { %p1403_p3 = por %p1402_p2, %p1401_p1 }
 0x264   : > { %p1404_p4 = pnand %p1403_p3, %p1397_p12 }
 0x266   : > { %1407 = shalt.err (!%p1404_p4)
}
 0x267   : > { %1135 = dma.vmem_to_hbm [thread:$0]  (%p1519_p5), %s1859_s6, 32, %s1857_s9, %s945_s10  }
 0x268 PF: > { %p1145_p7 = scmp.ge.s32.totalorder %s1446_s15, 2  ;;  %s986_s29 = sand.u32 1, %s1434_s12  }
 0x269   : > { %s987_s30 = scalar_lea.sflag [#allocation4], %s986_s29 }
 0x26a   : > { %p1139_p8 = pnand %p1145_p7, %p1523_p6 }
 0x26c   : > { %1425 = dma.done.wait (!%p1139_p8), %s987_s30, 512  }
 0x26d   : > { %1427 = vsyncadd (!%p1139_p8), %s987_s30, 4294966784  ;;  %s996_s4 = scalar_lea.sflag [#allocation6], %s986_s29 }
 0x26e   : > { %1429 = dma.done.wait (!%p1139_p8), %s996_s4, 32  }
 0x26f   : > { %1431 = vsyncadd (!%p1139_p8), %s996_s4, 4294967264  ;;  %p17_p5 = scmp.ge.s32.totalorder %s1506_s18, 4   ;;  %s1906_s12 = smov %s1438_s13 }
 0x270   : > { %s1907_s13 = smov %s1442_s14  ;;  %s1908_s14 = smov %s1517_s21 }
 0x271   : > { %s1909_s15 = smov %s1506_s18  ;;  %19 = sbr.rel (!%p17_p5) target bundleno = 5 (0x5), region = 83 }
 0x278   :  { %1001 = vsyncpa [#allocation4], 1 }
 0x279   :  { %1003 = vsyncpa [#allocation4 + $0x1], 1 }
 0x27a   :  { %1004 = vsyncpa [#allocation6], 1 }
 0x27b   :  { %1006 = vsyncpa [#allocation6 + $0x1], 1 }

</bundles_post_ra>
